<compile_context>
chip_gen: v5e
topology: v5e:2x2
jax: 0.10.0
libtpu: 0.0.40
codegen_flags: <defaults>
</compile_context>

<pallas_src>
import jax
import jax.numpy as jnp
from jax.experimental import pallas as pl
from jax.experimental.pallas import tpu as pltpu


# ---------------------------------------------------------------------------
# Kernel: fused 4-layer MLP (3x Linear+ReLU, 1x Linear)
# ---------------------------------------------------------------------------
def mlp_kernel(x_ref, w1_ref, b1_ref, w2_ref, b2_ref, w3_ref, b3_ref,
               wc_ref, bc_ref, o_ref):
    # x_ref : (TB, D)        w*_ref : (K, 128)      b*_ref : (1, 128)
    # o_ref : (TB, 128)  (padded classes; sliced in the wrapper)
    h = jnp.dot(x_ref[...], w1_ref[...], preferred_element_type=jnp.float32)
    h = jnp.maximum(h + b1_ref[...], 0.0)
    h = jnp.dot(h, w2_ref[...], preferred_element_type=jnp.float32)
    h = jnp.maximum(h + b2_ref[...], 0.0)
    h = jnp.dot(h, w3_ref[...], preferred_element_type=jnp.float32)
    h = jnp.maximum(h + b3_ref[...], 0.0)
    y = jnp.dot(h, wc_ref[...], preferred_element_type=jnp.float32) + bc_ref[...]
    o_ref[...] = y.astype(o_ref.dtype)


# ---------------------------------------------------------------------------
# Wrapper
# ---------------------------------------------------------------------------
def _prep_linear(w, b, in_pad, out_pad, in_scale=1.0):
    """PyTorch (out,in) weight -> zero-padded (in_pad, out_pad), bias -> (1, out_pad).

    `in_scale` folds a constant input scaling (e.g. 1/255) into the weights.
    """
    wt = (w.astype(jnp.float32) * in_scale).T                    # (in, out)
    wt = jnp.pad(wt, ((0, in_pad - wt.shape[0]), (0, out_pad - wt.shape[1])))
    bp = jnp.pad(b.astype(jnp.float32), (0, out_pad - b.shape[0]))
    return wt, bp.reshape(1, out_pad)


@jax.jit
def mlp_forward(x, params):
    B = x.shape[0]
    xf = x.reshape(B, -1).astype(jnp.float32)        # x.view(B, -1); /255 folded into W1
    D = xf.shape[1]                                   # 3*28*28 = 2352
    C = params["wc"].shape[0]                         # num_classes
    HP = 128                                          # hidden 100 -> 128 (lane aligned)
    CP = 128                                          # classes -> 128 (lane-dense store)

    w1, b1 = _prep_linear(params["w1"], params["b1"], D, HP, in_scale=1.0 / 255.0)
    w2, b2 = _prep_linear(params["w2"], params["b2"], HP, HP)
    w3, b3 = _prep_linear(params["w3"], params["b3"], HP, HP)
    wc, bc = _prep_linear(params["wc"], params["bc"], HP, CP)

    # Whole batch in one grid step when small; tile + parallel axis when large
    # (v7x: 2 TensorCores shard the parallel axis; no-op on v5e/v6e).
    TB = B if B <= 256 else 256
    grid = (pl.cdiv(B, TB),)

    def full(shape):
        return pl.BlockSpec(shape, lambda i: (0,) * len(shape))

    out = pl.pallas_call(
        mlp_kernel,
        out_shape=jax.ShapeDtypeStruct((B, CP), jnp.float32),
        grid_spec=pltpu.PrefetchScalarGridSpec(
            num_scalar_prefetch=0,
            grid=grid,
            in_specs=[
                pl.BlockSpec((TB, D), lambda i: (i, 0)),   # activations (batch-tiled)
                full((D, HP)), full((1, HP)),              # layer 1
                full((HP, HP)), full((1, HP)),             # layer 2
                full((HP, HP)), full((1, HP)),             # layer 3
                full((HP, CP)), full((1, CP)),             # classifier
            ],
            out_specs=pl.BlockSpec((TB, CP), lambda i: (i, 0)),
        ),
        compiler_params=pltpu.CompilerParams(
            dimension_semantics=("parallel",)),
    )(xf, w1, b1, w2, b2, w3, b3, wc, bc)

    return out[:, :C]                                  # drop class padding


# ---------------------------------------------------------------------------
# Pure-JAX reference (PyTorch semantics) for correctness check
# ---------------------------------------------------------------------------
def reference_forward(x, params):
    xf = x.reshape(x.shape[0], -1).astype(jnp.float32) / 255.0
    h = jnp.maximum(xf @ params["w1"].T + params["b1"], 0.0)
    h = jnp.maximum(h @ params["w2"].T + params["b2"], 0.0)
    h = jnp.maximum(h @ params["w3"].T + params["b3"], 0.0)
    return h @ params["wc"].T + params["bc"]


# ---------------------------------------------------------------------------
if __name__ == "__main__":
    num_classes = 10
    B, C_in, HH, WW = 2, 3, 28, 28      # module hardcodes 3*28*28 input features
    D = C_in * HH * WW                  # 2352
    H = 100

    key = jax.random.PRNGKey(0)
    ks = jax.random.split(key, 9)

    # image-like input in [0, 255]
    x = jax.random.uniform(ks[0], (B, C_in, HH, WW), jnp.float32, 0.0, 255.0)

    def init_linear(kw, kb, fan_in, fan_out):
        bound = 1.0 / (fan_in ** 0.5)
        w = jax.random.uniform(kw, (fan_out, fan_in), jnp.float32, -bound, bound)
        b = jax.random.uniform(kb, (fan_out,), jnp.float32, -bound, bound)
        return w, b

    w1, b1 = init_linear(ks[1], ks[2], D, H)
    w2, b2 = init_linear(ks[3], ks[4], H, H)
    w3, b3 = init_linear(ks[5], ks[6], H, H)
    wc, bc = init_linear(ks[7], ks[8], H, num_classes)

    params = {"w1": w1, "b1": b1, "w2": w2, "b2": b2,
              "w3": w3, "b3": b3, "wc": wc, "bc": bc}

    out = jax.block_until_ready(mlp_forward(x, params))
    ref = jax.block_until_ready(reference_forward(x, params))

    assert out.shape == (B, num_classes), out.shape
    max_err = float(jnp.max(jnp.abs(out - ref)))
    scale = float(jnp.max(jnp.abs(ref))) + 1.0
    assert max_err <= 2e-2 * scale, f"mismatch vs reference: max|err|={max_err}"

    print("KERNEL_OK")
</pallas_src>

<mosaic_0001>
module attributes {stable_mosaic.version = 11 : i64} {
  func.func @mlp_kernel(%arg0: i32, %arg1: memref<2x2352xf32, #tpu.memory_space<vmem>>, %arg2: memref<2352x128xf32, #tpu.memory_space<vmem>>, %arg3: memref<1x128xf32, #tpu.memory_space<vmem>>, %arg4: memref<128x128xf32, #tpu.memory_space<vmem>>, %arg5: memref<1x128xf32, #tpu.memory_space<vmem>>, %arg6: memref<128x128xf32, #tpu.memory_space<vmem>>, %arg7: memref<1x128xf32, #tpu.memory_space<vmem>>, %arg8: memref<128x128xf32, #tpu.memory_space<vmem>>, %arg9: memref<1x128xf32, #tpu.memory_space<vmem>>, %arg10: memref<2x128xf32, #tpu.memory_space<vmem>>) attributes {dimension_semantics = [#tpu.dimension_semantics<parallel>], iteration_bounds = array<i64: 1>, scalar_prefetch = 0 : i64, scratch_operands = 0 : i64, tpu.core_type = #tpu.core_type<tc>, window_params = [{transform_indices = @transform_0, window_bounds = array<i64: 2, 2352>}, {pipeline_mode = #tpu.pipeline_mode<synchronous>, transform_indices = @transform_1, window_bounds = array<i64: 2352, 128>}, {pipeline_mode = #tpu.pipeline_mode<synchronous>, transform_indices = @transform_2, window_bounds = array<i64: 1, 128>}, {pipeline_mode = #tpu.pipeline_mode<synchronous>, transform_indices = @transform_3, window_bounds = array<i64: 128, 128>}, {pipeline_mode = #tpu.pipeline_mode<synchronous>, transform_indices = @transform_4, window_bounds = array<i64: 1, 128>}, {pipeline_mode = #tpu.pipeline_mode<synchronous>, transform_indices = @transform_5, window_bounds = array<i64: 128, 128>}, {pipeline_mode = #tpu.pipeline_mode<synchronous>, transform_indices = @transform_6, window_bounds = array<i64: 1, 128>}, {pipeline_mode = #tpu.pipeline_mode<synchronous>, transform_indices = @transform_7, window_bounds = array<i64: 128, 128>}, {pipeline_mode = #tpu.pipeline_mode<synchronous>, transform_indices = @transform_8, window_bounds = array<i64: 1, 128>}, {transform_indices = @transform_9, window_bounds = array<i64: 2, 128>}]} {
    %c0 = arith.constant 0 : index
    %c0_0 = arith.constant 0 : index
    %0 = vector.load %arg1[%c0, %c0_0] : memref<2x2352xf32, #tpu.memory_space<vmem>>, vector<2x2352xf32>
    %c0_1 = arith.constant 0 : index
    %c0_2 = arith.constant 0 : index
    %1 = vector.load %arg2[%c0_1, %c0_2] : memref<2352x128xf32, #tpu.memory_space<vmem>>, vector<2352x128xf32>
    %cst = arith.constant dense<0.000000e+00> : vector<2x128xf32>
    %2 = tpu.matmul %0, %1, %cst {dimension_numbers = #tpu.dot_dimension_numbers<[1], [0], [0], [1], [0, 0, 1, 1], [], []>} : vector<2x2352xf32>, vector<2352x128xf32>, vector<2x128xf32> -> vector<2x128xf32>
    %c0_3 = arith.constant 0 : index
    %c0_4 = arith.constant 0 : index
    %3 = vector.load %arg3[%c0_3, %c0_4] : memref<1x128xf32, #tpu.memory_space<vmem>>, vector<1x128xf32>
    %4 = vector.broadcast %3 : vector<1x128xf32> to vector<2x128xf32>
    %5 = arith.addf %2, %4 : vector<2x128xf32>
    %cst_5 = arith.constant 0.000000e+00 : f32
    %6 = vector.broadcast %cst_5 : f32 to vector<2x128xf32>
    %7 = arith.maximumf %5, %6 : vector<2x128xf32>
    %c0_6 = arith.constant 0 : index
    %c0_7 = arith.constant 0 : index
    %8 = vector.load %arg4[%c0_6, %c0_7] : memref<128x128xf32, #tpu.memory_space<vmem>>, vector<128x128xf32>
    %cst_8 = arith.constant dense<0.000000e+00> : vector<2x128xf32>
    %9 = tpu.matmul %7, %8, %cst_8 {dimension_numbers = #tpu.dot_dimension_numbers<[1], [0], [0], [1], [0, 0, 1, 1], [], []>} : vector<2x128xf32>, vector<128x128xf32>, vector<2x128xf32> -> vector<2x128xf32>
    %c0_9 = arith.constant 0 : index
    %c0_10 = arith.constant 0 : index
    %10 = vector.load %arg5[%c0_9, %c0_10] : memref<1x128xf32, #tpu.memory_space<vmem>>, vector<1x128xf32>
    %11 = vector.broadcast %10 : vector<1x128xf32> to vector<2x128xf32>
    %12 = arith.addf %9, %11 : vector<2x128xf32>
    %cst_11 = arith.constant 0.000000e+00 : f32
    %13 = vector.broadcast %cst_11 : f32 to vector<2x128xf32>
    %14 = arith.maximumf %12, %13 : vector<2x128xf32>
    %c0_12 = arith.constant 0 : index
    %c0_13 = arith.constant 0 : index
    %15 = vector.load %arg6[%c0_12, %c0_13] : memref<128x128xf32, #tpu.memory_space<vmem>>, vector<128x128xf32>
    %cst_14 = arith.constant dense<0.000000e+00> : vector<2x128xf32>
    %16 = tpu.matmul %14, %15, %cst_14 {dimension_numbers = #tpu.dot_dimension_numbers<[1], [0], [0], [1], [0, 0, 1, 1], [], []>} : vector<2x128xf32>, vector<128x128xf32>, vector<2x128xf32> -> vector<2x128xf32>
    %c0_15 = arith.constant 0 : index
    %c0_16 = arith.constant 0 : index
    %17 = vector.load %arg7[%c0_15, %c0_16] : memref<1x128xf32, #tpu.memory_space<vmem>>, vector<1x128xf32>
    %18 = vector.broadcast %17 : vector<1x128xf32> to vector<2x128xf32>
    %19 = arith.addf %16, %18 : vector<2x128xf32>
    %cst_17 = arith.constant 0.000000e+00 : f32
    %20 = vector.broadcast %cst_17 : f32 to vector<2x128xf32>
    %21 = arith.maximumf %19, %20 : vector<2x128xf32>
    %c0_18 = arith.constant 0 : index
    %c0_19 = arith.constant 0 : index
    %22 = vector.load %arg8[%c0_18, %c0_19] : memref<128x128xf32, #tpu.memory_space<vmem>>, vector<128x128xf32>
    %cst_20 = arith.constant dense<0.000000e+00> : vector<2x128xf32>
    %23 = tpu.matmul %21, %22, %cst_20 {dimension_numbers = #tpu.dot_dimension_numbers<[1], [0], [0], [1], [0, 0, 1, 1], [], []>} : vector<2x128xf32>, vector<128x128xf32>, vector<2x128xf32> -> vector<2x128xf32>
    %c0_21 = arith.constant 0 : index
    %c0_22 = arith.constant 0 : index
    %24 = vector.load %arg9[%c0_21, %c0_22] : memref<1x128xf32, #tpu.memory_space<vmem>>, vector<1x128xf32>
    %25 = vector.broadcast %24 : vector<1x128xf32> to vector<2x128xf32>
    %26 = arith.addf %23, %25 : vector<2x128xf32>
    %c0_23 = arith.constant 0 : index
    %c0_24 = arith.constant 0 : index
    %27 = vector.load %arg10[%c0_23, %c0_24] : memref<2x128xf32, #tpu.memory_space<vmem>>, vector<2x128xf32>
    tpu.vector_store %arg10[%c0_23, %c0_24], %26 {strides = array<i32>} : memref<2x128xf32, #tpu.memory_space<vmem>>, vector<2x128xf32>,
    return
  }
  func.func @transform_0(%arg0: i32) -> (i32, i32) {
    %c0_i32 = arith.constant 0 : i32
    %c0_i32_0 = arith.constant 0 : i32
    return %arg0, %c0_i32 : i32, i32
  }
  func.func @transform_1(%arg0: i32) -> (i32, i32) {
    %c0_i32 = arith.constant 0 : i32
    %c0_i32_0 = arith.constant 0 : i32
    %c0_i32_1 = arith.constant 0 : i32
    return %c0_i32, %c0_i32_0 : i32, i32
  }
  func.func @transform_2(%arg0: i32) -> (i32, i32) {
    %c0_i32 = arith.constant 0 : i32
    %c0_i32_0 = arith.constant 0 : i32
    %c0_i32_1 = arith.constant 0 : i32
    return %c0_i32, %c0_i32_0 : i32, i32
  }
  func.func @transform_3(%arg0: i32) -> (i32, i32) {
    %c0_i32 = arith.constant 0 : i32
    %c0_i32_0 = arith.constant 0 : i32
    %c0_i32_1 = arith.constant 0 : i32
    return %c0_i32, %c0_i32_0 : i32, i32
  }
  func.func @transform_4(%arg0: i32) -> (i32, i32) {
    %c0_i32 = arith.constant 0 : i32
    %c0_i32_0 = arith.constant 0 : i32
    %c0_i32_1 = arith.constant 0 : i32
    return %c0_i32, %c0_i32_0 : i32, i32
  }
  func.func @transform_5(%arg0: i32) -> (i32, i32) {
    %c0_i32 = arith.constant 0 : i32
    %c0_i32_0 = arith.constant 0 : i32
    %c0_i32_1 = arith.constant 0 : i32
    return %c0_i32, %c0_i32_0 : i32, i32
  }
  func.func @transform_6(%arg0: i32) -> (i32, i32) {
    %c0_i32 = arith.constant 0 : i32
    %c0_i32_0 = arith.constant 0 : i32
    %c0_i32_1 = arith.constant 0 : i32
    return %c0_i32, %c0_i32_0 : i32, i32
  }
  func.func @transform_7(%arg0: i32) -> (i32, i32) {
    %c0_i32 = arith.constant 0 : i32
    %c0_i32_0 = arith.constant 0 : i32
    %c0_i32_1 = arith.constant 0 : i32
    return %c0_i32, %c0_i32_0 : i32, i32
  }
  func.func @transform_8(%arg0: i32) -> (i32, i32) {
    %c0_i32 = arith.constant 0 : i32
    %c0_i32_0 = arith.constant 0 : i32
    %c0_i32_1 = arith.constant 0 : i32
    return %c0_i32, %c0_i32_0 : i32, i32
  }
  func.func @transform_9(%arg0: i32) -> (i32, i32) {
    %c0_i32 = arith.constant 0 : i32
    %c0_i32_0 = arith.constant 0 : i32
    return %arg0, %c0_i32 : i32, i32
  }
}

</mosaic_0001>

<bundles_post_ra>
// kernel: mlp_forward.1
= control target key start
LH: loop header
LB: loop body
LE: loop exit
PB: predicated region body
PF: predicated region fallthrough
CT: control target
= control target key end

     0   :  { %s2079_s0 = inlined_call_operand.vmem [shape: f32[2,2352], index: 0, kind: input, shape index: {}]   ;;  %s2080_s1 = inlined_call_operand.vmem [shape: f32[2352,128], index: 1, kind: input, shape index: {}]   ;;  %s2081_s2 = inlined_call_operand.vmem [shape: f32[1,128], index: 2, kind: input, shape index: {}]   ;;  %s2082_s3 = inlined_call_operand.vmem [shape: f32[128,128], index: 3, kind: input, shape index: {}]   ;;  %s2083_s4 = inlined_call_operand.vmem [shape: f32[1,128], index: 4, kind: input, shape index: {}]   ;;  %s2084_s5 = inlined_call_operand.vmem [shape: f32[128,128], index: 5, kind: input, shape index: {}]   ;;  %s2085_s6 = inlined_call_operand.vmem [shape: f32[1,128], index: 6, kind: input, shape index: {}]   ;;  %s2086_s7 = inlined_call_operand.vmem [shape: f32[128,128], index: 7, kind: input, shape index: {}]   ;;  %s2087_s8 = inlined_call_operand.vmem [shape: f32[1,128], index: 8, kind: input, shape index: {}]   ;;  %s2088_s9 = inlined_call_operand.hbm [shape: f32[2,128], index: 9, kind: output, shape index: {}]  }
   0x1   :  { %v53_v0 = vld [vmem:[%s2080_s1 + $0x78] sm:$0xff]  ;;  %v52_v2 = vld [vmem:[%s2080_s1 + $0x70] sm:$0xff]  ;;  %v51_v6 = vld [vmem:[%s2080_s1 + $0x68] sm:$0xff] }
   0x2   :  { %v85_v1 = vld [vmem:[%s2080_s1 + $0x178] sm:$0xff]  ;;  %387 = vmatpush.msra.mxu0 %v53_v0  ;;  %v84_v4 = vld [vmem:[%s2080_s1 + $0x170] sm:$0xff]  ;;  %v83_v8 = vld [vmem:[%s2080_s1 + $0x168] sm:$0xff] }
   0x3   :  { %427 = vmatpush.msra.mxu2 %v85_v1  ;;  %v69_v3 = vld [vmem:[%s2080_s1 + $0xf8] sm:$0xff]  ;;  %v68_v7 = vld [vmem:[%s2080_s1 + $0xf0] sm:$0xff]  ;;  %v67_v10 = vld [vmem:[%s2080_s1 + $0xe8] sm:$0xff] }
   0x4   :  { %v101_v5 = vld [vmem:[%s2080_s1 + $0x1f8] sm:$0xff]  ;;  %407 = vmatpush.msra.mxu1 %v69_v3  ;;  %388 = vmatpush.msra.mxu0 %v52_v2  ;;  %v100_v9 = vld [vmem:[%s2080_s1 + $0x1f0] sm:$0xff]  ;;  %v50_v11 = vld [vmem:[%s2080_s1 + $0x60] sm:$0xff] }
   0x5   :  { %447 = vmatpush.msra.mxu3 %v101_v5  ;;  %428 = vmatpush.msra.mxu2 %v84_v4  ;;  %v82_v12 = vld [vmem:[%s2080_s1 + $0x160] sm:$0xff]  ;;  %v99_v13 = vld [vmem:[%s2080_s1 + $0x1e8] sm:$0xff]  ;;  %v49_v16 = vld [vmem:[%s2080_s1 + $0x58] sm:$0xff] }
   0x6   :  { %408 = vmatpush.msra.mxu1 %v68_v7  ;;  %389 = vmatpush.msra.mxu0 %v51_v6  ;;  %v66_v14 = vld [vmem:[%s2080_s1 + $0xe0] sm:$0xff]  ;;  %v81_v17 = vld [vmem:[%s2080_s1 + $0x158] sm:$0xff]  ;;  %v48_v20 = vld [vmem:[%s2080_s1 + $0x50] sm:$0xff] }
   0x7   :  { %448 = vmatpush.msra.mxu3 %v100_v9  ;;  %429 = vmatpush.msra.mxu2 %v83_v8  ;;  %v98_v15 = vld [vmem:[%s2080_s1 + $0x1e0] sm:$0xff]  ;;  %v65_v18 = vld [vmem:[%s2080_s1 + $0xd8] sm:$0xff]  ;;  %v80_v21 = vld [vmem:[%s2080_s1 + $0x150] sm:$0xff] }
   0x8   :  { %409 = vmatpush.msra.mxu1 %v67_v10  ;;  %390 = vmatpush.msra.mxu0 %v50_v11  ;;  %v97_v19 = vld [vmem:[%s2080_s1 + $0x1d8] sm:$0xff]  ;;  %v64_v22 = vld [vmem:[%s2080_s1 + $0xd0] sm:$0xff]  ;;  %v47_v24 = vld [vmem:[%s2080_s1 + $0x48] sm:$0xff] }
   0x9   :  { %449 = vmatpush.msra.mxu3 %v99_v13  ;;  %430 = vmatpush.msra.mxu2 %v82_v12  ;;  %v96_v23 = vld [vmem:[%s2080_s1 + $0x1d0] sm:$0xff]  ;;  %v79_v25 = vld [vmem:[%s2080_s1 + $0x148] sm:$0xff]  ;;  %v46_v28 = vld [vmem:[%s2080_s1 + $0x40] sm:$0xff] }
   0xa   :  { %410 = vmatpush.msra.mxu1 %v66_v14  ;;  %391 = vmatpush.msra.mxu0 %v49_v16  ;;  %v63_v26 = vld [vmem:[%s2080_s1 + $0xc8] sm:$0xff]  ;;  %v78_v29 = vld [vmem:[%s2080_s1 + $0x140] sm:$0xff]  ;;  %v45_v32 = vld [vmem:[%s2080_s1 + $0x38] sm:$0xff] }
   0xb   :  { %450 = vmatpush.msra.mxu3 %v98_v15  ;;  %431 = vmatpush.msra.mxu2 %v81_v17  ;;  %v95_v27 = vld [vmem:[%s2080_s1 + $0x1c8] sm:$0xff]  ;;  %v62_v30 = vld [vmem:[%s2080_s1 + $0xc0] sm:$0xff]  ;;  %v77_v33 = vld [vmem:[%s2080_s1 + $0x138] sm:$0xff] }
   0xc   :  { %411 = vmatpush.msra.mxu1 %v65_v18  ;;  %392 = vmatpush.msra.mxu0 %v48_v20  ;;  %v94_v31 = vld [vmem:[%s2080_s1 + $0x1c0] sm:$0xff]  ;;  %v61_v34 = vld [vmem:[%s2080_s1 + $0xb8] sm:$0xff]  ;;  %v44_v36 = vld [vmem:[%s2080_s1 + $0x30] sm:$0xff] }
   0xd   :  { %451 = vmatpush.msra.mxu3 %v97_v19  ;;  %432 = vmatpush.msra.mxu2 %v80_v21  ;;  %v93_v35 = vld [vmem:[%s2080_s1 + $0x1b8] sm:$0xff]  ;;  %v76_v37 = vld [vmem:[%s2080_s1 + $0x130] sm:$0xff]  ;;  %v43_v40 = vld [vmem:[%s2080_s1 + $0x28] sm:$0xff] }
   0xe   :  { %412 = vmatpush.msra.mxu1 %v64_v22  ;;  %393 = vmatpush.msra.mxu0 %v47_v24  ;;  %v60_v38 = vld [vmem:[%s2080_s1 + $0xb0] sm:$0xff]  ;;  %v75_v41 = vld [vmem:[%s2080_s1 + $0x128] sm:$0xff]  ;;  %v42_v44 = vld [vmem:[%s2080_s1 + $0x20] sm:$0xff] }
   0xf   :  { %452 = vmatpush.msra.mxu3 %v96_v23  ;;  %433 = vmatpush.msra.mxu2 %v79_v25  ;;  %v92_v39 = vld [vmem:[%s2080_s1 + $0x1b0] sm:$0xff]  ;;  %v59_v42 = vld [vmem:[%s2080_s1 + $0xa8] sm:$0xff]  ;;  %v74_v45 = vld [vmem:[%s2080_s1 + $0x120] sm:$0xff] }
  0x10   :  { %413 = vmatpush.msra.mxu1 %v63_v26  ;;  %394 = vmatpush.msra.mxu0 %v46_v28  ;;  %v91_v43 = vld [vmem:[%s2080_s1 + $0x1a8] sm:$0xff]  ;;  %v58_v46 = vld [vmem:[%s2080_s1 + $0xa0] sm:$0xff]  ;;  %v41_v48 = vld [vmem:[%s2080_s1 + $0x18] sm:$0xff] }
  0x11   :  { %453 = vmatpush.msra.mxu3 %v95_v27  ;;  %434 = vmatpush.msra.mxu2 %v78_v29  ;;  %v90_v47 = vld [vmem:[%s2080_s1 + $0x1a0] sm:$0xff]  ;;  %v73_v49 = vld [vmem:[%s2080_s1 + $0x118] sm:$0xff]  ;;  %v40_v52 = vld [vmem:[%s2080_s1 + $0x10] sm:$0xff] }
  0x12   :  { %414 = vmatpush.msra.mxu1 %v62_v30  ;;  %395 = vmatpush.msra.mxu0 %v45_v32  ;;  %v57_v50 = vld [vmem:[%s2080_s1 + $0x98] sm:$0xff]  ;;  %v72_v53 = vld [vmem:[%s2080_s1 + $0x110] sm:$0xff]  ;;  %v39_v56 = vld [vmem:[%s2080_s1 + $0x8] sm:$0xff] }
  0x13   :  { %454 = vmatpush.msra.mxu3 %v94_v31  ;;  %435 = vmatpush.msra.mxu2 %v77_v33  ;;  %v89_v51 = vld [vmem:[%s2080_s1 + $0x198] sm:$0xff]  ;;  %v56_v54 = vld [vmem:[%s2080_s1 + $0x90] sm:$0xff]  ;;  %v71_v57 = vld [vmem:[%s2080_s1 + $0x108] sm:$0xff] }
  0x14   :  { %415 = vmatpush.msra.mxu1 %v61_v34  ;;  %396 = vmatpush.msra.mxu0 %v44_v36  ;;  %v88_v55 = vld [vmem:[%s2080_s1 + $0x190] sm:$0xff]  ;;  %v55_v58 = vld [vmem:[%s2080_s1 + $0x88] sm:$0xff]  ;;  %v38_v60 = vld [vmem:[%s2080_s1] sm:$0xff] }
  0x15   :  { %455 = vmatpush.msra.mxu3 %v93_v35  ;;  %436 = vmatpush.msra.mxu2 %v76_v37  ;;  %v87_v59 = vld [vmem:[%s2080_s1 + $0x188] sm:$0xff]  ;;  %v70_v61 = vld [vmem:[%s2080_s1 + $0x100] sm:$0xff]  ;;  %v117_v62 = vld [vmem:[%s2080_s1 + $0x278] sm:$0xff] }
  0x16   :  { %416 = vmatpush.msra.mxu1 %v60_v38  ;;  %397 = vmatpush.msra.mxu0 %v43_v40  ;;  %v149_v63 = vld [vmem:[%s2080_s1 + $0x378] sm:$0xff]  ;;  %v54_v0 = vld [vmem:[%s2080_s1 + $0x80] sm:$0xff]  ;;  %v116_v2 = vld [vmem:[%s2080_s1 + $0x270] sm:$0xff] }
  0x17   :  { %456 = vmatpush.msra.mxu3 %v92_v39  ;;  %437 = vmatpush.msra.mxu2 %v75_v41  ;;  %v86_v1 = vld [vmem:[%s2080_s1 + $0x180] sm:$0xff]  ;;  %v133_v3 = vld [vmem:[%s2080_s1 + $0x2f8] sm:$0xff]  ;;  %v148_v4 = vld [vmem:[%s2080_s1 + $0x370] sm:$0xff] }
  0x18   :  { %417 = vmatpush.msra.mxu1 %v59_v42  ;;  %398 = vmatpush.msra.mxu0 %v42_v44  ;;  %v165_v5 = vld [vmem:[%s2080_s1 + $0x3f8] sm:$0xff]  ;;  %v115_v6 = vld [vmem:[%s2080_s1 + $0x268] sm:$0xff]  ;;  %v132_v7 = vld [vmem:[%s2080_s1 + $0x2f0] sm:$0xff] }
  0x19   :  { %457 = vmatpush.msra.mxu3 %v91_v43  ;;  %438 = vmatpush.msra.mxu2 %v74_v45  ;;  %v147_v8 = vld [vmem:[%s2080_s1 + $0x368] sm:$0xff]  ;;  %v164_v9 = vld [vmem:[%s2080_s1 + $0x3f0] sm:$0xff]  ;;  %v114_v10 = vld [vmem:[%s2080_s1 + $0x260] sm:$0xff] }
  0x1a   :  { %418 = vmatpush.msra.mxu1 %v58_v46  ;;  %399 = vmatpush.msra.mxu0 %v41_v48  ;;  %v131_v11 = vld [vmem:[%s2080_s1 + $0x2e8] sm:$0xff]  ;;  %v146_v12 = vld [vmem:[%s2080_s1 + $0x360] sm:$0xff]  ;;  %v113_v14 = vld [vmem:[%s2080_s1 + $0x258] sm:$0xff] }
  0x1b   :  { %458 = vmatpush.msra.mxu3 %v90_v47  ;;  %439 = vmatpush.msra.mxu2 %v73_v49  ;;  %v163_v13 = vld [vmem:[%s2080_s1 + $0x3e8] sm:$0xff]  ;;  %v130_v15 = vld [vmem:[%s2080_s1 + $0x2e0] sm:$0xff]  ;;  %v145_v16 = vld [vmem:[%s2080_s1 + $0x358] sm:$0xff] }
  0x1c   :  { %419 = vmatpush.msra.mxu1 %v57_v50  ;;  %400 = vmatpush.msra.mxu0 %v40_v52  ;;  %v162_v17 = vld [vmem:[%s2080_s1 + $0x3e0] sm:$0xff]  ;;  %v112_v18 = vld [vmem:[%s2080_s1 + $0x250] sm:$0xff]  ;;  %v129_v19 = vld [vmem:[%s2080_s1 + $0x2d8] sm:$0xff] }
  0x1d   :  { %459 = vmatpush.msra.mxu3 %v89_v51  ;;  %440 = vmatpush.msra.mxu2 %v72_v53  ;;  %v144_v20 = vld [vmem:[%s2080_s1 + $0x350] sm:$0xff]  ;;  %v161_v21 = vld [vmem:[%s2080_s1 + $0x3d8] sm:$0xff]  ;;  %v33_v22 = vld [vmem:[%s2079_s0] sm:$0xff] }
  0x1e   :  { %420 = vmatpush.msra.mxu1 %v56_v54  ;;  %401 = vmatpush.msra.mxu0 %v39_v56  ;;  %v111_v23 = vld [vmem:[%s2080_s1 + $0x248] sm:$0xff]  ;;  %v128_v24 = vld [vmem:[%s2080_s1 + $0x2d0] sm:$0xff]  ;;  %341 = vst [vmem:[#allocation1] ss:$4 sm:$0xff] %v33_v22  ;;  %v110_v27 = vld [vmem:[%s2080_s1 + $0x240] sm:$0xff] }
  0x1f   :  { %460 = vmatpush.msra.mxu3 %v88_v55  ;;  %441 = vmatpush.msra.mxu2 %v71_v57  ;;  %v143_v25 = vld [vmem:[%s2080_s1 + $0x348] sm:$0xff]  ;;  %v160_v26 = vld [vmem:[%s2080_s1 + $0x3d0] sm:$0xff]  ;;  %v142_v29 = vld [vmem:[%s2080_s1 + $0x340] sm:$0xff] }
  0x20   :  { %421 = vmatpush.msra.mxu1 %v55_v58  ;;  %402 = vmatpush.msra.mxu0 %v38_v60  ;;  %v127_v28 = vld [vmem:[%s2080_s1 + $0x2c8] sm:$0xff]  ;;  %v109_v31 = vld [vmem:[%s2080_s1 + $0x238] sm:$0xff]  ;;  %v126_v32 = vld [vmem:[%s2080_s1 + $0x2c0] sm:$0xff] }
  0x21   :  { %461 = vmatpush.msra.mxu3 %v87_v59  ;;  %442 = vmatpush.msra.mxu2 %v70_v61  ;;  %v159_v30 = vld [vmem:[%s2080_s1 + $0x3c8] sm:$0xff]  ;;  %v141_v33 = vld [vmem:[%s2080_s1 + $0x338] sm:$0xff]  ;;  %v158_v34 = vld [vmem:[%s2080_s1 + $0x3c0] sm:$0xff] }
  0x22   :  { %467 = vmatpush.msrb.mxu0 %v117_v62  ;;  %422 = vmatpush.msra.mxu1 %v54_v0  ;;  %v108_v35 = vld [vmem:[%s2080_s1 + $0x230] sm:$0xff]  ;;  %v125_v36 = vld [vmem:[%s2080_s1 + $0x2b8] sm:$0xff]  ;;  %v34_v39 = vld [vmem:[%s2079_s0 + $0x8] sm:$0xff] }
  0x23   :  { %507 = vmatpush.msrb.mxu2 %v149_v63  ;;  %462 = vmatpush.msra.mxu3 %v86_v1  ;;  %v140_v37 = vld [vmem:[%s2080_s1 + $0x330] sm:$0xff]  ;;  %v157_v38 = vld [vmem:[%s2080_s1 + $0x3b8] sm:$0xff]  ;;  %v107_v40 = vld [vmem:[%s2080_s1 + $0x228] sm:$0xff]  ;;  %343 = vst [vmem:[#allocation1 + $0x20] ss:$4 sm:$0xff] %v34_v39 }
  0x24   :  { %468 = vmatpush.msrb.mxu0 %v116_v2  ;;  %487 = vmatpush.msrb.mxu1 %v133_v3  ;;  %v124_v41 = vld [vmem:[%s2080_s1 + $0x2b0] sm:$0xff]  ;;  %v139_v43 = vld [vmem:[%s2080_s1 + $0x328] sm:$0xff]  ;;  %v106_v49 = vld [vmem:[%s2080_s1 + $0x220] sm:$0xff] }
  0x25   :  { %508 = vmatpush.msrb.mxu2 %v148_v4  ;;  %527 = vmatpush.msrb.mxu3 %v165_v5  ;;  %v35_v42 = vld [vmem:[%s2079_s0 + $0x10] sm:$0xff]  ;;  %v1314_v45 = vld.sshfl [vmem:[#allocation1] sm:$0xff pattern:$0x73625140]  ;;  %v123_v50 = vld [vmem:[%s2080_s1 + $0x2a8] sm:$0xff] }
  0x26   :  { %469 = vmatpush.msrb.mxu0 %v115_v6  ;;  %488 = vmatpush.msrb.mxu1 %v132_v7  ;;  %v346_v44 = vld.sshfl [vmem:[#allocation1 + $0x10] sm:$0xff pattern:$0x73625140]  ;;  %v1316_v46 = vld.sshfl [vmem:[#allocation1 + $0x18] sm:$0xff pattern:$0x73625140] }
  0x27   :  { %509 = vmatpush.msrb.mxu2 %v147_v8  ;;  %528 = vmatpush.msrb.mxu3 %v164_v9  ;;  %v1318_v47 = vld.sshfl [vmem:[#allocation1 + $0x8] sm:$0xff pattern:$0x73625140]  ;;  %v156_v48 = vld [vmem:[%s2080_s1 + $0x3b0] sm:$0xff]  ;;  %v138_v51 = vld [vmem:[%s2080_s1 + $0x320] sm:$0xff] }
  0x28   :  { %470 = vmatpush.msrb.mxu0 %v114_v10  ;;  %489 = vmatpush.msrb.mxu1 %v131_v11  ;;  %352 = vst [vmem:[#allocation1] ss:$4 sm:$0xff] %v35_v42  ;;  %v155_v52 = vld [vmem:[%s2080_s1 + $0x3a8] sm:$0xff]  ;;  %v105_v53 = vld [vmem:[%s2080_s1 + $0x218] sm:$0xff]  ;;  %v122_v54 = vld [vmem:[%s2080_s1 + $0x2a0] sm:$0xff] }
  0x29   :  { %510 = vmatpush.msrb.mxu2 %v146_v12  ;;  %529 = vmatpush.msrb.mxu3 %v163_v13  ;;  %v137_v55 = vld [vmem:[%s2080_s1 + $0x318] sm:$0xff]  ;;  %v154_v56 = vld [vmem:[%s2080_s1 + $0x3a0] sm:$0xff]  ;;  %v104_v57 = vld [vmem:[%s2080_s1 + $0x210] sm:$0xff] }
  0x2a   :  { %471 = vmatpush.msrb.mxu0 %v113_v14  ;;  %490 = vmatpush.msrb.mxu1 %v130_v15  ;;  %v121_v58 = vld [vmem:[%s2080_s1 + $0x298] sm:$0xff]  ;;  %v1356_v60 = vld.sshfl [vmem:[#allocation1 + $0x30] sm:$0xff pattern:$0x73625140]  ;;  %v103_v2 = vld [vmem:[%s2080_s1 + $0x208] sm:$0xff] }
  0x2b   :  { %511 = vmatpush.msrb.mxu2 %v145_v16  ;;  %530 = vmatpush.msrb.mxu3 %v162_v17  ;;  %v36_v59 = vld [vmem:[%s2079_s0 + $0x18] sm:$0xff]  ;;  %v1358_v61 = vld.sshfl [vmem:[#allocation1 + $0x20] sm:$0xff pattern:$0x73625140]  ;;  %v136_v0 = vld [vmem:[%s2080_s1 + $0x310] sm:$0xff] }
  0x2c   :  { %472 = vmatpush.msrb.mxu0 %v112_v18  ;;  %491 = vmatpush.msrb.mxu1 %v129_v19  ;;  %v1360_v62 = vld.sshfl [vmem:[#allocation1 + $0x38] sm:$0xff pattern:$0x73625140]  ;;  %v1362_v63 = vld.sshfl [vmem:[#allocation1 + $0x28] sm:$0xff pattern:$0x73625140] }
  0x2d   :  { %512 = vmatpush.msrb.mxu2 %v144_v20  ;;  %531 = vmatpush.msrb.mxu3 %v161_v21  ;;  %v153_v1 = vld [vmem:[%s2080_s1 + $0x398] sm:$0xff]  ;;  %353 = vst [vmem:[#allocation1 + $0x20] ss:$4 sm:$0xff] %v36_v59  ;;  %v120_v3 = vld [vmem:[%s2080_s1 + $0x290] sm:$0xff]  ;;  %v135_v4 = vld [vmem:[%s2080_s1 + $0x308] sm:$0xff] }
  0x2e   :  { %473 = vmatpush.msrb.mxu0 %v111_v23  ;;  %492 = vmatpush.msrb.mxu1 %v128_v24  ;;  %v152_v5 = vld [vmem:[%s2080_s1 + $0x390] sm:$0xff]  ;;  %v102_v6 = vld [vmem:[%s2080_s1 + $0x200] sm:$0xff]  ;;  %v119_v7 = vld [vmem:[%s2080_s1 + $0x288] sm:$0xff] }
  0x2f   :  { %513 = vmatpush.msrb.mxu2 %v143_v25  ;;  %532 = vmatpush.msrb.mxu3 %v160_v26  ;;  %v134_v8 = vld [vmem:[%s2080_s1 + $0x300] sm:$0xff]  ;;  %v151_v9 = vld [vmem:[%s2080_s1 + $0x388] sm:$0xff]  ;;  %v181_v10 = vld [vmem:[%s2080_s1 + $0x478] sm:$0xff] }
  0x30   :  { %474 = vmatpush.msrb.mxu0 %v110_v27  ;;  %493 = vmatpush.msrb.mxu1 %v127_v28  ;;  %v213_v11 = vld [vmem:[%s2080_s1 + $0x578] sm:$0xff]  ;;  %v118_v12 = vld [vmem:[%s2080_s1 + $0x280] sm:$0xff]  ;;  %v180_v14 = vld [vmem:[%s2080_s1 + $0x470] sm:$0xff] }
  0x31   :  { %514 = vmatpush.msrb.mxu2 %v142_v29  ;;  %533 = vmatpush.msrb.mxu3 %v159_v30  ;;  %v150_v13 = vld [vmem:[%s2080_s1 + $0x380] sm:$0xff]  ;;  %v197_v15 = vld [vmem:[%s2080_s1 + $0x4f8] sm:$0xff]  ;;  %v212_v16 = vld [vmem:[%s2080_s1 + $0x570] sm:$0xff] }
  0x32   :  { %475 = vmatpush.msrb.mxu0 %v109_v31  ;;  %494 = vmatpush.msrb.mxu1 %v126_v32  ;;  %v229_v17 = vld [vmem:[%s2080_s1 + $0x5f8] sm:$0xff]  ;;  %v179_v18 = vld [vmem:[%s2080_s1 + $0x468] sm:$0xff]  ;;  %v196_v19 = vld [vmem:[%s2080_s1 + $0x4f0] sm:$0xff] }
  0x33   :  { %515 = vmatpush.msrb.mxu2 %v141_v33  ;;  %534 = vmatpush.msrb.mxu3 %v158_v34  ;;  %v211_v20 = vld [vmem:[%s2080_s1 + $0x568] sm:$0xff]  ;;  %v228_v21 = vld [vmem:[%s2080_s1 + $0x5f0] sm:$0xff]  ;;  %v178_v22 = vld [vmem:[%s2080_s1 + $0x460] sm:$0xff] }
  0x34   :  { %476 = vmatpush.msrb.mxu0 %v108_v35  ;;  %495 = vmatpush.msrb.mxu1 %v125_v36  ;;  %v195_v23 = vld [vmem:[%s2080_s1 + $0x4e8] sm:$0xff]  ;;  %v210_v24 = vld [vmem:[%s2080_s1 + $0x560] sm:$0xff]  ;;  %v1444_v26 = vld.sshfl [vmem:[#allocation1 + $0x10] sm:$0xff pattern:$0x73625140] }
  0x35   :  { %516 = vmatpush.msrb.mxu2 %v140_v37  ;;  %535 = vmatpush.msrb.mxu3 %v157_v38  ;;  %v1442_v25 = vld.sshfl [vmem:[#allocation1] sm:$0xff pattern:$0x73625140]  ;;  %v1446_v27 = vld.sshfl [vmem:[#allocation1 + $0x8] sm:$0xff pattern:$0x73625140] }
  0x36   :  { %477 = vmatpush.msrb.mxu0 %v107_v40  ;;  %496 = vmatpush.msrb.mxu1 %v124_v41  ;;  %v227_v28 = vld [vmem:[%s2080_s1 + $0x5e8] sm:$0xff]  ;;  %v37_v29 = vld [vmem:[%s2079_s0 + $0x20] sm:$0x3f]  ;;  %v1454_v30 = vld.sshfl [vmem:[#allocation1 + $0x18] sm:$0xff pattern:$0x73625140] }
  0x37   :  { %517 = vmatpush.msrb.mxu2 %v139_v43  ;;  %536 = vmatpush.msrb.mxu3 %v156_v48  ;;  %v177_v31 = vld [vmem:[%s2080_s1 + $0x458] sm:$0xff]  ;;  %v194_v32 = vld [vmem:[%s2080_s1 + $0x4e0] sm:$0xff]  ;;  %362 = vst [vmem:[#allocation1] ss:$4 sm:$0xff] %v37_v29  ;;  %v176_v35 = vld [vmem:[%s2080_s1 + $0x450] sm:$0xff] }
  0x38   :  { %478 = vmatpush.msrb.mxu0 %v106_v49  ;;  %497 = vmatpush.msrb.mxu1 %v123_v50  ;;  %v209_v33 = vld [vmem:[%s2080_s1 + $0x558] sm:$0xff]  ;;  %v226_v34 = vld [vmem:[%s2080_s1 + $0x5e0] sm:$0xff]  ;;  %v208_v37 = vld [vmem:[%s2080_s1 + $0x550] sm:$0xff] }
  0x39   :  { %518 = vmatpush.msrb.mxu2 %v138_v51  ;;  %537 = vmatpush.msrb.mxu3 %v155_v52  ;;  %v193_v36 = vld [vmem:[%s2080_s1 + $0x4d8] sm:$0xff]  ;;  %v175_v39 = vld [vmem:[%s2080_s1 + $0x448] sm:$0xff]  ;;  %v192_v40 = vld [vmem:[%s2080_s1 + $0x4d0] sm:$0xff] }
  0x3a   :  { %479 = vmatpush.msrb.mxu0 %v105_v53  ;;  %498 = vmatpush.msrb.mxu1 %v122_v54  ;;  %v225_v38 = vld [vmem:[%s2080_s1 + $0x5d8] sm:$0xff] }
  0x3b   :  { %519 = vmatpush.msrb.mxu2 %v137_v55  ;;  %538 = vmatpush.msrb.mxu3 %v154_v56 }
  0x3c   :  { %480 = vmatpush.msrb.mxu0 %v104_v57  ;;  %499 = vmatpush.msrb.mxu1 %v121_v58 }
  0x3d   :  { %520 = vmatpush.msrb.mxu2 %v136_v0  ;;  %539 = vmatpush.msrb.mxu3 %v153_v1 }
  0x3e   :  { %481 = vmatpush.msrb.mxu0 %v103_v2  ;;  %500 = vmatpush.msrb.mxu1 %v120_v3 }
  0x3f   :  { %521 = vmatpush.msrb.mxu2 %v135_v4  ;;  %540 = vmatpush.msrb.mxu3 %v152_v5 }
  0x40   :  { %443 = vmatmul.f32.vlgmr.msra.gmra.mxu2 %v346_v44  ;;  %482 = vmatpush.msrb.mxu0 %v102_v6 }
  0x41   :  { %501 = vmatpush.msrb.mxu1 %v119_v7  ;;  %522 = vmatpush.msrb.mxu2 %v134_v8 }
  0x42   :  { %541 = vmatpush.msrb.mxu3 %v151_v9  ;;  %403 = vmatmul.f32.vlgmr.msra.gmra.mxu0 %v1314_v45 }
  0x43   :  { %463 = vmatmul.f32.vlgmr.msra.gmra.mxu3 %v1316_v46  ;;  %547 = vmatpush.msra.mxu0 %v181_v10 }
  0x44   :  { %587 = vmatpush.msra.mxu2 %v213_v11  ;;  %502 = vmatpush.msrb.mxu1 %v118_v12 }
  0x45   :  { %542 = vmatpush.msrb.mxu3 %v150_v13  ;;  %423 = vmatmul.f32.vlgmr.msra.gmra.mxu1 %v1318_v47 }
  0x46   :  { %548 = vmatpush.msra.mxu0 %v180_v14  ;;  %567 = vmatpush.msra.mxu1 %v197_v15 }
  0x47   :  { %588 = vmatpush.msra.mxu2 %v212_v16  ;;  %607 = vmatpush.msra.mxu3 %v229_v17 }
  0x48   :  { %549 = vmatpush.msra.mxu0 %v179_v18  ;;  %568 = vmatpush.msra.mxu1 %v196_v19 }
  0x49   :  { %589 = vmatpush.msra.mxu2 %v211_v20  ;;  %608 = vmatpush.msra.mxu3 %v228_v21 }
  0x4a   :  { %523 = vmatmul.f32.vlgmr.msrb.gmra.mxu2 %v1356_v60  ;;  %550 = vmatpush.msra.mxu0 %v178_v22 }
  0x4b   :  { %569 = vmatpush.msra.mxu1 %v195_v23  ;;  %590 = vmatpush.msra.mxu2 %v210_v24 }
  0x4c   :  { %609 = vmatpush.msra.mxu3 %v227_v28  ;;  %483 = vmatmul.f32.vlgmr.msrb.gmra.mxu0 %v1358_v61 }
  0x4d   :  { %543 = vmatmul.f32.vlgmr.msrb.gmra.mxu3 %v1360_v62  ;;  %551 = vmatpush.msra.mxu0 %v177_v31 }
  0x4e   :  { %570 = vmatpush.msra.mxu1 %v194_v32  ;;  %591 = vmatpush.msra.mxu2 %v209_v33 }
  0x4f   :  { %610 = vmatpush.msra.mxu3 %v226_v34  ;;  %503 = vmatmul.f32.vlgmr.msrb.gmra.mxu1 %v1362_v63 }
  0x50   :  { %14 = vsyncpa [#allocation3], 0  ;;  %552 = vmatpush.msra.mxu0 %v176_v35  ;;  %571 = vmatpush.msra.mxu1 %v193_v36  ;;  %v207_v41 = vld [vmem:[%s2080_s1 + $0x548] sm:$0xff]  ;;  %v224_v42 = vld [vmem:[%s2080_s1 + $0x5d0] sm:$0xff]  ;;  %vm384_vm0 = vcmask 392192   ;;  %s939_s28 = smov [#allocation2]  }
  0x51   :  { %592 = vmatpush.msra.mxu2 %v208_v37  ;;  %611 = vmatpush.msra.mxu3 %v225_v38  ;;  %v174_v43 = vld [vmem:[%s2080_s1 + $0x440] sm:$0xff]  ;;  %v191_v44 = vld [vmem:[%s2080_s1 + $0x4c8] sm:$0xff]  ;;  %v173_v47 = vld [vmem:[%s2080_s1 + $0x438] sm:$0xff]  ;;  %s896_s29 = sshll.u32 %s939_s28, 4  ;;  %s897_s29 = int_to_ptr.vmem [resolvable:$true] %s896_s29 }
  0x52   :  { %553 = vmatpush.msra.mxu0 %v175_v39  ;;  %572 = vmatpush.msra.mxu1 %v192_v40  ;;  %v206_v45 = vld [vmem:[%s2080_s1 + $0x540] sm:$0xff]  ;;  %v223_v46 = vld [vmem:[%s2080_s1 + $0x5c8] sm:$0xff]  ;;  %v205_v49 = vld [vmem:[%s2080_s1 + $0x538] sm:$0xff] }
  0x53   :  { %593 = vmatpush.msra.mxu2 %v207_v41  ;;  %612 = vmatpush.msra.mxu3 %v224_v42  ;;  %v190_v48 = vld [vmem:[%s2080_s1 + $0x4c0] sm:$0xff]  ;;  %v172_v51 = vld [vmem:[%s2080_s1 + $0x430] sm:$0xff]  ;;  %v189_v52 = vld [vmem:[%s2080_s1 + $0x4b8] sm:$0xff] }
  0x54   :  { %554 = vmatpush.msra.mxu0 %v174_v43  ;;  %573 = vmatpush.msra.mxu1 %v191_v44  ;;  %v222_v50 = vld [vmem:[%s2080_s1 + $0x5c0] sm:$0xff]  ;;  %v204_v53 = vld [vmem:[%s2080_s1 + $0x530] sm:$0xff]  ;;  %v221_v54 = vld [vmem:[%s2080_s1 + $0x5b8] sm:$0xff] }
  0x55   :  { %594 = vmatpush.msra.mxu2 %v206_v45  ;;  %613 = vmatpush.msra.mxu3 %v223_v46  ;;  %v171_v55 = vld [vmem:[%s2080_s1 + $0x428] sm:$0xff]  ;;  %v188_v56 = vld [vmem:[%s2080_s1 + $0x4b0] sm:$0xff]  ;;  %v170_v59 = vld [vmem:[%s2080_s1 + $0x420] sm:$0xff] }
  0x56   :  { %555 = vmatpush.msra.mxu0 %v173_v47  ;;  %574 = vmatpush.msra.mxu1 %v190_v48  ;;  %v203_v57 = vld [vmem:[%s2080_s1 + $0x528] sm:$0xff]  ;;  %v220_v58 = vld [vmem:[%s2080_s1 + $0x5b0] sm:$0xff]  ;;  %v202_v61 = vld [vmem:[%s2080_s1 + $0x520] sm:$0xff] }
  0x57   :  { %595 = vmatpush.msra.mxu2 %v205_v49  ;;  %614 = vmatpush.msra.mxu3 %v222_v50  ;;  %v187_v60 = vld [vmem:[%s2080_s1 + $0x4a8] sm:$0xff]  ;;  %v169_v63 = vld [vmem:[%s2080_s1 + $0x418] sm:$0xff]  ;;  %v186_v0 = vld [vmem:[%s2080_s1 + $0x4a0] sm:$0xff] }
  0x58   :  { %556 = vmatpush.msra.mxu0 %v172_v51  ;;  %575 = vmatpush.msra.mxu1 %v189_v52  ;;  %v219_v62 = vld [vmem:[%s2080_s1 + $0x5a8] sm:$0xff]  ;;  %v201_v1 = vld [vmem:[%s2080_s1 + $0x518] sm:$0xff]  ;;  %v218_v2 = vld [vmem:[%s2080_s1 + $0x5a0] sm:$0xff] }
  0x59   :  { %596 = vmatpush.msra.mxu2 %v204_v53  ;;  %615 = vmatpush.msra.mxu3 %v221_v54  ;;  %v168_v3 = vld [vmem:[%s2080_s1 + $0x410] sm:$0xff]  ;;  %v185_v4 = vld [vmem:[%s2080_s1 + $0x498] sm:$0xff]  ;;  %v167_v7 = vld [vmem:[%s2080_s1 + $0x408] sm:$0xff] }
  0x5a   :  { %557 = vmatpush.msra.mxu0 %v171_v55  ;;  %576 = vmatpush.msra.mxu1 %v188_v56  ;;  %v200_v5 = vld [vmem:[%s2080_s1 + $0x510] sm:$0xff]  ;;  %v217_v6 = vld [vmem:[%s2080_s1 + $0x598] sm:$0xff]  ;;  %v199_v9 = vld [vmem:[%s2080_s1 + $0x508] sm:$0xff] }
  0x5b   :  { %597 = vmatpush.msra.mxu2 %v203_v57  ;;  %616 = vmatpush.msra.mxu3 %v220_v58  ;;  %v184_v8 = vld [vmem:[%s2080_s1 + $0x490] sm:$0xff]  ;;  %v166_v11 = vld [vmem:[%s2080_s1 + $0x400] sm:$0xff]  ;;  %v183_v12 = vld [vmem:[%s2080_s1 + $0x488] sm:$0xff] }
  0x5c   :  { %558 = vmatpush.msra.mxu0 %v170_v59  ;;  %577 = vmatpush.msra.mxu1 %v187_v60  ;;  %v216_v10 = vld [vmem:[%s2080_s1 + $0x590] sm:$0xff]  ;;  %v198_v13 = vld [vmem:[%s2080_s1 + $0x500] sm:$0xff]  ;;  %v215_v14 = vld [vmem:[%s2080_s1 + $0x588] sm:$0xff] }
  0x5d   :  { %598 = vmatpush.msra.mxu2 %v202_v61  ;;  %617 = vmatpush.msra.mxu3 %v219_v62  ;;  %v245_v15 = vld [vmem:[%s2080_s1 + $0x678] sm:$0xff]  ;;  %v182_v17 = vld [vmem:[%s2080_s1 + $0x480] sm:$0xff]  ;;  %v244_v19 = vld [vmem:[%s2080_s1 + $0x670] sm:$0xff] }
  0x5e   :  { %559 = vmatpush.msra.mxu0 %v169_v63  ;;  %578 = vmatpush.msra.mxu1 %v186_v0  ;;  %v277_v16 = vld [vmem:[%s2080_s1 + $0x778] sm:$0xff]  ;;  %v214_v18 = vld [vmem:[%s2080_s1 + $0x580] sm:$0xff]  ;;  %v276_v21 = vld [vmem:[%s2080_s1 + $0x770] sm:$0xff] }
  0x5f   :  { %599 = vmatpush.msra.mxu2 %v201_v1  ;;  %618 = vmatpush.msra.mxu3 %v218_v2  ;;  %v261_v20 = vld [vmem:[%s2080_s1 + $0x6f8] sm:$0xff]  ;;  %v243_v23 = vld [vmem:[%s2080_s1 + $0x668] sm:$0xff]  ;;  %v260_v24 = vld [vmem:[%s2080_s1 + $0x6f0] sm:$0xff] }
  0x60   :  { %560 = vmatpush.msra.mxu0 %v168_v3  ;;  %579 = vmatpush.msra.mxu1 %v185_v4  ;;  %v293_v22 = vld [vmem:[%s2080_s1 + $0x7f8] sm:$0xff]  ;;  %v259_v28 = vld [vmem:[%s2080_s1 + $0x6e8] sm:$0xff]  ;;  %v274_v29 = vld [vmem:[%s2080_s1 + $0x760] sm:$0xff] }
  0x61   :  { %600 = vmatpush.msra.mxu2 %v200_v5  ;;  %619 = vmatpush.msra.mxu3 %v217_v6  ;;  %v241_v31 = vld [vmem:[%s2080_s1 + $0x658] sm:$0xff]  ;;  %v258_v32 = vld [vmem:[%s2080_s1 + $0x6e0] sm:$0xff]  ;;  %v240_v35 = vld [vmem:[%s2080_s1 + $0x650] sm:$0xff] }
  0x62   :  { %561 = vmatpush.msra.mxu0 %v167_v7  ;;  %580 = vmatpush.msra.mxu1 %v184_v8  ;;  %v273_v33 = vld [vmem:[%s2080_s1 + $0x758] sm:$0xff]  ;;  %v290_v34 = vld [vmem:[%s2080_s1 + $0x7e0] sm:$0xff]  ;;  %v272_v37 = vld [vmem:[%s2080_s1 + $0x750] sm:$0xff] }
  0x63   :  { %601 = vmatpush.msra.mxu2 %v199_v9  ;;  %620 = vmatpush.msra.mxu3 %v216_v10  ;;  %v257_v36 = vld [vmem:[%s2080_s1 + $0x6d8] sm:$0xff]  ;;  %v239_v39 = vld [vmem:[%s2080_s1 + $0x648] sm:$0xff]  ;;  %v256_v40 = vld [vmem:[%s2080_s1 + $0x6d0] sm:$0xff] }
  0x64   :  { %562 = vmatpush.msra.mxu0 %v166_v11  ;;  %581 = vmatpush.msra.mxu1 %v183_v12  ;;  %v289_v38 = vld [vmem:[%s2080_s1 + $0x7d8] sm:$0xff]  ;;  %v271_v41 = vld [vmem:[%s2080_s1 + $0x748] sm:$0xff]  ;;  %v288_v42 = vld [vmem:[%s2080_s1 + $0x7d0] sm:$0xff] }
  0x65   :  { %602 = vmatpush.msra.mxu2 %v198_v13  ;;  %621 = vmatpush.msra.mxu3 %v215_v14  ;;  %v238_v43 = vld [vmem:[%s2080_s1 + $0x640] sm:$0xff]  ;;  %v255_v44 = vld [vmem:[%s2080_s1 + $0x6c8] sm:$0xff]  ;;  %v237_v47 = vld [vmem:[%s2080_s1 + $0x638] sm:$0xff] }
  0x66   :  { %563 = vmatmul.f32.vlgmr.msra.gmra.mxu0 %v1442_v25  ;;  %603 = vmatmul.f32.vlgmr.msra.gmra.mxu2 %v1444_v26  ;;  %v275_v25 = vld [vmem:[%s2080_s1 + $0x768] sm:$0xff]  ;;  %v292_v26 = vld [vmem:[%s2080_s1 + $0x7f0] sm:$0xff]  ;;  %v270_v45 = vld [vmem:[%s2080_s1 + $0x740] sm:$0xff] }
  0x67   :  { %627 = vmatpush.msrb.mxu0 %v245_v15  ;;  %667 = vmatpush.msrb.mxu2 %v277_v16  ;;  %v287_v46 = vld [vmem:[%s2080_s1 + $0x7c8] sm:$0xff]  ;;  %v254_v48 = vld [vmem:[%s2080_s1 + $0x6c0] sm:$0xff]  ;;  %v269_v49 = vld [vmem:[%s2080_s1 + $0x738] sm:$0xff] }
  0x68   :  { %582 = vmatpush.msra.mxu1 %v182_v17  ;;  %622 = vmatpush.msra.mxu3 %v214_v18  ;;  %v286_v50 = vld [vmem:[%s2080_s1 + $0x7c0] sm:$0xff]  ;;  %v236_v51 = vld [vmem:[%s2080_s1 + $0x630] sm:$0xff]  ;;  %v253_v52 = vld [vmem:[%s2080_s1 + $0x6b8] sm:$0xff] }
  0x69   :  { %583 = vmatmul.f32.vlgmr.msra.gmra.mxu1 %v1446_v27  ;;  %623 = vmatmul.f32.vlgmr.msra.gmra.mxu3 %v1454_v30  ;;  %v242_v27 = vld [vmem:[%s2080_s1 + $0x660] sm:$0xff]  ;;  %v291_v30 = vld [vmem:[%s2080_s1 + $0x7e8] sm:$0xff]  ;;  %v268_v53 = vld [vmem:[%s2080_s1 + $0x730] sm:$0xff] }
  0x6a   :  { %628 = vmatpush.msrb.mxu0 %v244_v19  ;;  %647 = vmatpush.msrb.mxu1 %v261_v20  ;;  %v285_v54 = vld [vmem:[%s2080_s1 + $0x7b8] sm:$0xff]  ;;  %v235_v55 = vld [vmem:[%s2080_s1 + $0x628] sm:$0xff]  ;;  %v252_v56 = vld [vmem:[%s2080_s1 + $0x6b0] sm:$0xff] }
  0x6b   :  { %668 = vmatpush.msrb.mxu2 %v276_v21  ;;  %687 = vmatpush.msrb.mxu3 %v293_v22  ;;  %v267_v57 = vld [vmem:[%s2080_s1 + $0x728] sm:$0xff]  ;;  %v284_v58 = vld [vmem:[%s2080_s1 + $0x7b0] sm:$0xff]  ;;  %v234_v59 = vld [vmem:[%s2080_s1 + $0x620] sm:$0xff] }
  0x6c   :  { %629 = vmatpush.msrb.mxu0 %v243_v23  ;;  %648 = vmatpush.msrb.mxu1 %v260_v24  ;;  %v251_v60 = vld [vmem:[%s2080_s1 + $0x6a8] sm:$0xff]  ;;  %v266_v61 = vld [vmem:[%s2080_s1 + $0x720] sm:$0xff]  ;;  %v233_v63 = vld [vmem:[%s2080_s1 + $0x618] sm:$0xff] }
  0x6d   :  { %669 = vmatpush.msrb.mxu2 %v275_v25  ;;  %688 = vmatpush.msrb.mxu3 %v292_v26  ;;  %v283_v62 = vld [vmem:[%s2080_s1 + $0x7a8] sm:$0xff]  ;;  %v250_v0 = vld [vmem:[%s2080_s1 + $0x6a0] sm:$0xff]  ;;  %v265_v1 = vld [vmem:[%s2080_s1 + $0x718] sm:$0xff] }
  0x6e   :  { %630 = vmatpush.msrb.mxu0 %v242_v27  ;;  %649 = vmatpush.msrb.mxu1 %v259_v28  ;;  %v282_v2 = vld [vmem:[%s2080_s1 + $0x7a0] sm:$0xff]  ;;  %v232_v3 = vld [vmem:[%s2080_s1 + $0x610] sm:$0xff]  ;;  %v249_v4 = vld [vmem:[%s2080_s1 + $0x698] sm:$0xff] }
  0x6f   :  { %670 = vmatpush.msrb.mxu2 %v274_v29  ;;  %689 = vmatpush.msrb.mxu3 %v291_v30  ;;  %v264_v5 = vld [vmem:[%s2080_s1 + $0x710] sm:$0xff]  ;;  %v281_v6 = vld [vmem:[%s2080_s1 + $0x798] sm:$0xff]  ;;  %v231_v7 = vld [vmem:[%s2080_s1 + $0x608] sm:$0xff] }
  0x70   :  { %631 = vmatpush.msrb.mxu0 %v241_v31  ;;  %650 = vmatpush.msrb.mxu1 %v258_v32  ;;  %v248_v8 = vld [vmem:[%s2080_s1 + $0x690] sm:$0xff]  ;;  %v263_v9 = vld [vmem:[%s2080_s1 + $0x708] sm:$0xff]  ;;  %v230_v11 = vld [vmem:[%s2080_s1 + $0x600] sm:$0xff] }
  0x71   :  { %671 = vmatpush.msrb.mxu2 %v273_v33  ;;  %690 = vmatpush.msrb.mxu3 %v290_v34  ;;  %v280_v10 = vld [vmem:[%s2080_s1 + $0x790] sm:$0xff]  ;;  %v247_v12 = vld [vmem:[%s2080_s1 + $0x688] sm:$0xff]  ;;  %v262_v13 = vld [vmem:[%s2080_s1 + $0x700] sm:$0xff] }
  0x72   :  { %632 = vmatpush.msrb.mxu0 %v240_v35  ;;  %651 = vmatpush.msrb.mxu1 %v257_v36  ;;  %v279_v14 = vld [vmem:[%s2080_s1 + $0x788] sm:$0xff]  ;;  %v358_v15 = vld.sshfl [vmem:[#allocation1 + $0x20] sm:$0xff pattern:$0x73625140]  ;;  %v309_v17 = vld [vmem:[%s2080_s1 + $0x878] sm:$0xff] }
  0x73   :  { %672 = vmatpush.msrb.mxu2 %v272_v37  ;;  %691 = vmatpush.msrb.mxu3 %v289_v38  ;;  %v360_v16 = vld.sshfl [vmem:[#allocation1 + $0x30] sm:$0xff pattern:$0x73625140]  ;;  %v246_v18 = vld [vmem:[%s2080_s1 + $0x680] sm:$0xff]  ;;  %v325_v23 = vld [vmem:[%s2080_s1 + $0x8f8] sm:$0xff] }
  0x74   :  { %633 = vmatpush.msrb.mxu0 %v239_v39  ;;  %652 = vmatpush.msrb.mxu1 %v256_v40  ;;  %v278_v19 = vld [vmem:[%s2080_s1 + $0x780] sm:$0xff]  ;;  %v359_v20 = vld.sshfl [vmem:[#allocation1 + $0x28] sm:$0xff pattern:$0x73625140]  ;;  %v308_v22 = vld [vmem:[%s2080_s1 + $0x870] sm:$0xff] }
  0x75   :  { %673 = vmatpush.msrb.mxu2 %v271_v41  ;;  %692 = vmatpush.msrb.mxu3 %v288_v42  ;;  %v361_v21 = vld.sshfl [vmem:[#allocation1 + $0x38] sm:$0xff pattern:$0x73625140]  ;;  %v331_v24 = vld [vmem:[%s2080_s1 + $0x928] sm:$0xff]  ;;  %v324_v26 = vld [vmem:[%s2080_s1 + $0x8f0] sm:$0xff] }
  0x76   :  { %634 = vmatpush.msrb.mxu0 %v238_v43  ;;  %653 = vmatpush.msrb.mxu1 %v255_v44  ;;  %v307_v25 = vld [vmem:[%s2080_s1 + $0x868] sm:$0xff]  ;;  %v330_v27 = vld [vmem:[%s2080_s1 + $0x920] sm:$0xff]  ;;  %v329_v30 = vld [vmem:[%s2080_s1 + $0x918] sm:$0xff] }
  0x77   :  { %674 = vmatpush.msrb.mxu2 %v270_v45  ;;  %693 = vmatpush.msrb.mxu3 %v287_v46  ;;  %v306_v28 = vld [vmem:[%s2080_s1 + $0x860] sm:$0xff]  ;;  %v323_v29 = vld [vmem:[%s2080_s1 + $0x8e8] sm:$0xff]  ;;  %v305_v31 = vld [vmem:[%s2080_s1 + $0x858] sm:$0xff] }
  0x78   :  { %635 = vmatpush.msrb.mxu0 %v237_v47  ;;  %654 = vmatpush.msrb.mxu1 %v254_v48  ;;  %v322_v32 = vld [vmem:[%s2080_s1 + $0x8e0] sm:$0xff]  ;;  %v328_v33 = vld [vmem:[%s2080_s1 + $0x910] sm:$0xff]  ;;  %v321_v35 = vld [vmem:[%s2080_s1 + $0x8d8] sm:$0xff] }
  0x79   :  { %675 = vmatpush.msrb.mxu2 %v269_v49  ;;  %694 = vmatpush.msrb.mxu3 %v286_v50  ;;  %v304_v34 = vld [vmem:[%s2080_s1 + $0x850] sm:$0xff]  ;;  %v327_v36 = vld [vmem:[%s2080_s1 + $0x908] sm:$0xff]  ;;  %v326_v39 = vld [vmem:[%s2080_s1 + $0x900] sm:$0xff] }
  0x7a   :  { %636 = vmatpush.msrb.mxu0 %v236_v51  ;;  %655 = vmatpush.msrb.mxu1 %v253_v52  ;;  %v303_v37 = vld [vmem:[%s2080_s1 + $0x848] sm:$0xff]  ;;  %v320_v38 = vld [vmem:[%s2080_s1 + $0x8d0] sm:$0xff]  ;;  %v302_v40 = vld [vmem:[%s2080_s1 + $0x840] sm:$0xff] }
  0x7b   :  { %676 = vmatpush.msrb.mxu2 %v268_v53  ;;  %695 = vmatpush.msrb.mxu3 %v285_v54  ;;  %v365_v41 = vld.sshfl [vmem:[#allocation1 + $0x10] sm:$0xff pattern:$0x73625140]  ;;  %v319_v42 = vld [vmem:[%s2080_s1 + $0x8c8] sm:$0xff]  ;;  %v301_v43 = vld [vmem:[%s2080_s1 + $0x838] sm:$0xff] }
  0x7c   :  { %637 = vmatpush.msrb.mxu0 %v235_v55  ;;  %656 = vmatpush.msrb.mxu1 %v252_v56  ;;  %v318_v44 = vld [vmem:[%s2080_s1 + $0x8c0] sm:$0xff]  ;;  %v300_v45 = vld [vmem:[%s2080_s1 + $0x830] sm:$0xff]  ;;  %v317_v46 = vld [vmem:[%s2080_s1 + $0x8b8] sm:$0xff] }
  0x7d   :  { %677 = vmatpush.msrb.mxu2 %v267_v57  ;;  %696 = vmatpush.msrb.mxu3 %v284_v58  ;;  %v299_v47 = vld [vmem:[%s2080_s1 + $0x828] sm:$0xff]  ;;  %v316_v48 = vld [vmem:[%s2080_s1 + $0x8b0] sm:$0xff]  ;;  %v298_v49 = vld [vmem:[%s2080_s1 + $0x820] sm:$0xff] }
  0x7e   :  { %638 = vmatpush.msrb.mxu0 %v234_v59  ;;  %657 = vmatpush.msrb.mxu1 %v251_v60  ;;  %v315_v50 = vld [vmem:[%s2080_s1 + $0x8a8] sm:$0xff]  ;;  %v297_v51 = vld [vmem:[%s2080_s1 + $0x818] sm:$0xff]  ;;  %v314_v52 = vld [vmem:[%s2080_s1 + $0x8a0] sm:$0xff] }
  0x7f   :  { %678 = vmatpush.msrb.mxu2 %v266_v61  ;;  %697 = vmatpush.msrb.mxu3 %v283_v62  ;;  %v296_v53 = vld [vmem:[%s2080_s1 + $0x810] sm:$0xff]  ;;  %v313_v54 = vld [vmem:[%s2080_s1 + $0x898] sm:$0xff]  ;;  %v295_v55 = vld [vmem:[%s2080_s1 + $0x808] sm:$0xff] }
  0x80   :  { %639 = vmatpush.msrb.mxu0 %v233_v63  ;;  %658 = vmatpush.msrb.mxu1 %v250_v0  ;;  %v312_v56 = vld [vmem:[%s2080_s1 + $0x890] sm:$0xff]  ;;  %v294_v57 = vld [vmem:[%s2080_s1 + $0x800] sm:$0xff]  ;;  %v311_v58 = vld [vmem:[%s2080_s1 + $0x888] sm:$0xff] }
  0x81   :  { %679 = vmatpush.msrb.mxu2 %v265_v1  ;;  %698 = vmatpush.msrb.mxu3 %v282_v2  ;;  %v363_v59 = vld.sshfl [vmem:[#allocation1] sm:$0xff pattern:$0x73625140]  ;;  %v364_v61 = vld.sshfl [vmem:[#allocation1 + $0x8] sm:$0xff pattern:$0x73625140] }
  0x82   :  { %640 = vmatpush.msrb.mxu0 %v232_v3  ;;  %659 = vmatpush.msrb.mxu1 %v249_v4  ;;  %v310_v60 = vld [vmem:[%s2080_s1 + $0x880] sm:$0xff]  ;;  %v783_v0 = vld [vmem:[%s2082_s3 + $0x78] sm:$0xff]  ;;  %v782_v1 = vld [vmem:[%s2082_s3 + $0x70] sm:$0xff]  ;;  %s898_s1 = sshll.u32 %s2088_s9, 4  ;;  %s899_s1 = int_to_ptr.hbm [resolvable:$true] %s898_s1 }
  0x83   :  { %680 = vmatpush.msrb.mxu2 %v264_v5  ;;  %699 = vmatpush.msrb.mxu3 %v281_v6  ;;  %v909_v62 = vld [vmem:[%s2081_s2] ss:$0 sm:$0xff]  ;;  %v781_v4 = vld [vmem:[%s2082_s3 + $0x68] sm:$0xff] }
  0x84   :  { %641 = vmatpush.msrb.mxu0 %v231_v7  ;;  %660 = vmatpush.msrb.mxu1 %v248_v8  ;;  %v780_v5 = vld [vmem:[%s2082_s3 + $0x60] sm:$0xff]  ;;  %v779_v8 = vld [vmem:[%s2082_s3 + $0x58] sm:$0xff] }
  0x85   :  { %681 = vmatpush.msrb.mxu2 %v263_v9  ;;  %700 = vmatpush.msrb.mxu3 %v280_v10  ;;  %v778_v9 = vld [vmem:[%s2082_s3 + $0x50] sm:$0xff] }
  0x86   :  { %642 = vmatpush.msrb.mxu0 %v230_v11  ;;  %661 = vmatpush.msrb.mxu1 %v247_v12  ;;  %v777_v12 = vld [vmem:[%s2082_s3 + $0x48] sm:$0xff] }
  0x87   :  { %682 = vmatpush.msrb.mxu2 %v262_v13  ;;  %701 = vmatpush.msrb.mxu3 %v279_v14  ;;  %v776_v13 = vld [vmem:[%s2082_s3 + $0x40] sm:$0xff] }
  0x88   :  { %643 = vmatmul.f32.vlgmr.msrb.gmra.mxu0 %v358_v15  ;;  %683 = vmatmul.f32.vlgmr.msrb.gmra.mxu2 %v360_v16  ;;  %v775_v16 = vld [vmem:[%s2082_s3 + $0x38] sm:$0xff] }
  0x89   :  { %707 = vmatpush.msra.mxu0 %v309_v17  ;;  %662 = vmatpush.msrb.mxu1 %v246_v18  ;;  %v774_v17 = vld [vmem:[%s2082_s3 + $0x30] sm:$0xff] }
  0x8a   :  { %702 = vmatpush.msrb.mxu3 %v278_v19  ;;  %663 = vmatmul.f32.vlgmr.msrb.gmra.mxu1 %v359_v20  ;;  %v773_v20 = vld [vmem:[%s2082_s3 + $0x28] sm:$0xff] }
  0x8b   :  { %703 = vmatmul.f32.vlgmr.msrb.gmra.mxu3 %v361_v21  ;;  %708 = vmatpush.msra.mxu0 %v308_v22 }
  0x8c   :  { %727 = vmatpush.msra.mxu1 %v325_v23  ;;  %757 = vmatpush.msra.mxu2 %v331_v24  ;;  %v772_v23 = vld [vmem:[%s2082_s3 + $0x20] sm:$0xff]  ;;  %v771_v24 = vld [vmem:[%s2082_s3 + $0x18] sm:$0xff] }
  0x8d   :  { %709 = vmatpush.msra.mxu0 %v307_v25  ;;  %788 = vmatpush.msra.mxu3 %v783_v0 }
  0x8e   :  { %728 = vmatpush.msra.mxu1 %v324_v26  ;;  %758 = vmatpush.msra.mxu2 %v330_v27  ;;  %v770_v27 = vld [vmem:[%s2082_s3 + $0x10] sm:$0xff] }
  0x8f   :  { %710 = vmatpush.msra.mxu0 %v306_v28  ;;  %789 = vmatpush.msra.mxu3 %v782_v1 }
  0x90   :  { %729 = vmatpush.msra.mxu1 %v323_v29  ;;  %759 = vmatpush.msra.mxu2 %v329_v30  ;;  %v769_v29 = vld [vmem:[%s2082_s3 + $0x8] sm:$0xff] }
  0x91   :  { %711 = vmatpush.msra.mxu0 %v305_v31  ;;  %790 = vmatpush.msra.mxu3 %v781_v4  ;;  %v768_v31 = vld [vmem:[%s2082_s3] sm:$0xff]  ;;  %v810_v4 = vld [vmem:[%s2084_s5 + $0x8] sm:$0xff] }
  0x92   :  { %730 = vmatpush.msra.mxu1 %v322_v32  ;;  %760 = vmatpush.msra.mxu2 %v328_v33 }
  0x93   :  { %712 = vmatpush.msra.mxu0 %v304_v34  ;;  %791 = vmatpush.msra.mxu3 %v780_v5  ;;  %v824_v34 = vld [vmem:[%s2084_s5 + $0x78] sm:$0xff]  ;;  %v809_v5 = vld [vmem:[%s2084_s5] sm:$0xff] }
  0x94   :  { %731 = vmatpush.msra.mxu1 %v321_v35  ;;  %761 = vmatpush.msra.mxu2 %v327_v36  ;;  %v823_v35 = vld [vmem:[%s2084_s5 + $0x70] sm:$0xff] }
  0x95   :  { %713 = vmatpush.msra.mxu0 %v303_v37  ;;  %792 = vmatpush.msra.mxu3 %v779_v8  ;;  %v822_v37 = vld [vmem:[%s2084_s5 + $0x68] sm:$0xff] }
  0x96   :  { %732 = vmatpush.msra.mxu1 %v320_v38  ;;  %762 = vmatpush.msra.mxu2 %v326_v39  ;;  %v821_v39 = vld [vmem:[%s2084_s5 + $0x60] sm:$0xff]  ;;  %v863_v8 = vld [vmem:[%s2086_s7 + $0x68] sm:$0xff] }
  0x97   :  { %714 = vmatpush.msra.mxu0 %v302_v40  ;;  %907 = vmatmul.msk.f32.vlgmr.msra.gmra.mxu2 %vm384_vm0, %v365_v41 }
  0x98   :  { %733 = vmatpush.msra.mxu1 %v319_v42  ;;  %793 = vmatpush.msra.mxu3 %v778_v9  ;;  %v820_v42 = vld [vmem:[%s2084_s5 + $0x58] sm:$0xff]  ;;  %v862_v9 = vld [vmem:[%s2086_s7 + $0x60] sm:$0xff] }
  0x99   :  { %715 = vmatpush.msra.mxu0 %v301_v43  ;;  %829 = vmatpush.msrb.mxu2 %v824_v34 }
  0x9a   :  { %734 = vmatpush.msra.mxu1 %v318_v44  ;;  %794 = vmatpush.msra.mxu3 %v777_v12  ;;  %v819_v44 = vld [vmem:[%s2084_s5 + $0x50] sm:$0xff]  ;;  %v859_v12 = vld [vmem:[%s2086_s7 + $0x48] sm:$0xff] }
  0x9b   :  { %716 = vmatpush.msra.mxu0 %v300_v45  ;;  %830 = vmatpush.msrb.mxu2 %v823_v35 }
  0x9c   :  { %735 = vmatpush.msra.mxu1 %v317_v46  ;;  %795 = vmatpush.msra.mxu3 %v776_v13  ;;  %v818_v46 = vld [vmem:[%s2084_s5 + $0x48] sm:$0xff]  ;;  %v858_v13 = vld [vmem:[%s2086_s7 + $0x40] sm:$0xff] }
  0x9d   :  { %717 = vmatpush.msra.mxu0 %v299_v47  ;;  %831 = vmatpush.msrb.mxu2 %v822_v37 }
  0x9e   :  { %736 = vmatpush.msra.mxu1 %v316_v48  ;;  %796 = vmatpush.msra.mxu3 %v775_v16  ;;  %v855_v16 = vld [vmem:[%s2086_s7 + $0x28] sm:$0xff] }
  0x9f   :  { %718 = vmatpush.msra.mxu0 %v298_v49  ;;  %832 = vmatpush.msrb.mxu2 %v821_v39  ;;  %v817_v49 = vld [vmem:[%s2084_s5 + $0x40] sm:$0xff] }
  0xa0   :  { %737 = vmatpush.msra.mxu1 %v315_v50  ;;  %797 = vmatpush.msra.mxu3 %v774_v17  ;;  %v854_v17 = vld [vmem:[%s2086_s7 + $0x20] sm:$0xff] }
  0xa1   :  { %719 = vmatpush.msra.mxu0 %v297_v51  ;;  %833 = vmatpush.msrb.mxu2 %v820_v42  ;;  %v816_v51 = vld [vmem:[%s2084_s5 + $0x38] sm:$0xff] }
  0xa2   :  { %738 = vmatpush.msra.mxu1 %v314_v52  ;;  %798 = vmatpush.msra.mxu3 %v773_v20 }
  0xa3   :  { %720 = vmatpush.msra.mxu0 %v296_v53  ;;  %834 = vmatpush.msrb.mxu2 %v819_v44  ;;  %v815_v53 = vld [vmem:[%s2084_s5 + $0x30] sm:$0xff] }
  0xa4   :  { %739 = vmatpush.msra.mxu1 %v313_v54  ;;  %799 = vmatpush.msra.mxu3 %v772_v23  ;;  %v852_v23 = vld [vmem:[%s2086_s7 + $0x10] sm:$0xff] }
  0xa5   :  { %721 = vmatpush.msra.mxu0 %v295_v55  ;;  %835 = vmatpush.msrb.mxu2 %v818_v46 }
  0xa6   :  { %740 = vmatpush.msra.mxu1 %v312_v56  ;;  %800 = vmatpush.msra.mxu3 %v771_v24  ;;  %v814_v56 = vld [vmem:[%s2084_s5 + $0x28] sm:$0xff] }
  0xa7   :  { %722 = vmatpush.msra.mxu0 %v294_v57  ;;  %836 = vmatpush.msrb.mxu2 %v817_v49  ;;  %v813_v57 = vld [vmem:[%s2084_s5 + $0x20] sm:$0xff]  ;;  %v851_v24 = vld [vmem:[%s2086_s7 + $0x8] sm:$0xff] }
  0xa8   :  { %741 = vmatpush.msra.mxu1 %v311_v58  ;;  %723 = vmatmul.f32.vlgmr.msra.gmra.mxu0 %v363_v59 }
  0xa9   :  { %801 = vmatpush.msra.mxu3 %v770_v27  ;;  %837 = vmatpush.msrb.mxu2 %v816_v51 }
  0xaa   :  { %742 = vmatpush.msra.mxu1 %v310_v60  ;;  %v812_v60 = vld [vmem:[%s2084_s5 + $0x18] sm:$0xff] }
  0xab   :  { %743 = vmatmul.f32.vlgmr.msra.gmra.mxu1 %v364_v61  ;;  %802 = vmatpush.msra.mxu3 %v769_v29 }
  0xac   :  { %838 = vmatpush.msrb.mxu2 %v815_v53 }
  0xad   :  { %803 = vmatpush.msra.mxu3 %v768_v31 }
  0xae   :  { %839 = vmatpush.msrb.mxu2 %v814_v56 }
  0xb0   :  { %840 = vmatpush.msrb.mxu2 %v813_v57 }
  0xb2   :  { %841 = vmatpush.msrb.mxu2 %v812_v60 }
  0xbf   :  { %v404_v63 = vpop.f32.mrf.mxu0 }
  0xc0   :  { %v405_v2 = vadd.f32 %v909_v62, %v404_v63 }
  0xc2   :  { %v424_v3 = vpop.f32.mrf.mxu1 }
  0xc3   :  { %v425_v6 = vadd.f32 %v424_v3, %v405_v2  ;;  %v444_v7 = vpop.f32.mrf.mxu2  ;;  %v811_v3 = vld [vmem:[%s2084_s5 + $0x10] sm:$0xff] }
  0xc4   :  { %842 = vmatpush.msrb.mxu2 %v811_v3 }
  0xc5   :  { %v445_v10 = vadd.f32 %v444_v7, %v425_v6  ;;  %v865_v6 = vld [vmem:[%s2086_s7 + $0x78] sm:$0xff]  ;;  %v864_v7 = vld [vmem:[%s2086_s7 + $0x70] sm:$0xff] }
  0xc6   :  { %v464_v11 = vpop.f32.mrf.mxu3  ;;  %843 = vmatpush.msrb.mxu2 %v810_v4  ;;  %870 = vmatpush.msrb.mxu0 %v865_v6 }
  0xc7   :  { %v465_v14 = vadd.f32 %v464_v11, %v445_v10  ;;  %v861_v10 = vld [vmem:[%s2086_s7 + $0x58] sm:$0xff]  ;;  %v860_v11 = vld [vmem:[%s2086_s7 + $0x50] sm:$0xff] }
  0xc8   :  { %844 = vmatpush.msrb.mxu2 %v809_v5  ;;  %871 = vmatpush.msrb.mxu0 %v864_v7 }
  0xc9   :  { %v484_v15 = vpop.f32.mrf.mxu0 }
  0xca   :  { %v485_v18 = vadd.f32 %v484_v15, %v465_v14  ;;  %872 = vmatpush.msrb.mxu0 %v863_v8  ;;  %v857_v14 = vld [vmem:[%s2086_s7 + $0x38] sm:$0xff]  ;;  %v856_v15 = vld [vmem:[%s2086_s7 + $0x30] sm:$0xff] }
  0xcc   :  { %v504_v19 = vpop.f32.mrf.mxu1  ;;  %873 = vmatpush.msrb.mxu0 %v862_v9 }
  0xcd   :  { %v505_v21 = vadd.f32 %v504_v19, %v485_v18  ;;  %v524_v22 = vpop.f32.mrf.mxu2  ;;  %v853_v18 = vld [vmem:[%s2086_s7 + $0x18] sm:$0xff]  ;;  %v910_v19 = vld [vmem:[%s2083_s4] ss:$0 sm:$0xff] }
  0xce   :  { %874 = vmatpush.msrb.mxu0 %v861_v10 }
  0xcf   :  { %v525_v25 = vadd.f32 %v524_v22, %v505_v21 }
  0xd0   :  { %v544_v26 = vpop.f32.mrf.mxu3  ;;  %875 = vmatpush.msrb.mxu0 %v860_v11 }
  0xd1   :  { %v545_v30 = vadd.f32 %v544_v26, %v525_v25  ;;  %v850_v25 = vld [vmem:[%s2086_s7] sm:$0xff] }
  0xd2   :  { %876 = vmatpush.msrb.mxu0 %v859_v12  ;;  %v911_v26 = vld [vmem:[%s2085_s6] ss:$0 sm:$0xff] }
  0xd4   :  { %877 = vmatpush.msrb.mxu0 %v858_v13 }
  0xd6   :  { %878 = vmatpush.msrb.mxu0 %v857_v14 }
  0xd8   :  { %879 = vmatpush.msrb.mxu0 %v856_v15 }
  0xda   :  { %880 = vmatpush.msrb.mxu0 %v855_v16 }
  0xdc   :  { %881 = vmatpush.msrb.mxu0 %v854_v17 }
  0xde   :  { %882 = vmatpush.msrb.mxu0 %v853_v18 }
  0xe0   :  { %883 = vmatpush.msrb.mxu0 %v852_v23 }
  0xe2   :  { %884 = vmatpush.msrb.mxu0 %v851_v24 }
  0xe3   :  { %v564_v28 = vpop.f32.mrf.mxu0 }
  0xe4   :  { %v565_v32 = vadd.f32 %v564_v28, %v545_v30  ;;  %885 = vmatpush.msrb.mxu0 %v850_v25  ;;  %v912_v30 = vld [vmem:[%s2087_s8] ss:$0 sm:$0xff] }
  0xe6   :  { %v584_v33 = vpop.f32.mrf.mxu1 }
  0xe7   :  { %v585_v38 = vadd.f32 %v584_v33, %v565_v32 }
  0xe9   :  { %v604_v36 = vpop.f32.mrf.mxu2 }
  0xea   :  { %v605_v40 = vadd.f32 %v604_v36, %v585_v38 }
  0xec   :  { %v624_v41 = vpop.f32.mrf.mxu3 }
  0xed   :  { %v625_v45 = vadd.f32 %v624_v41, %v605_v40 }
 0x105   :  { %v644_v43 = vpop.f32.mrf.mxu0 }
 0x106   :  { %v645_v47 = vadd.f32 %v644_v43, %v625_v45 }
 0x107   :  { %v664_v48 = vpop.f32.mrf.mxu1 }
 0x108   :  { %v665_v52 = vadd.f32 %v664_v48, %v645_v47 }
 0x10b   :  { %v684_v50 = vpop.f32.mrf.mxu2 }
 0x10c   :  { %v685_v54 = vadd.f32 %v684_v50, %v665_v52 }
 0x10e   :  { %v704_v55 = vpop.f32.mrf.mxu3 }
 0x10f   :  { %v705_v58 = vadd.f32 %v704_v55, %v685_v54 }
 0x11a   :  { %v764_v63 = vpop.f32.mrf.mxu2 }
 0x125   :  { %v724_v59 = vpop.f32.mrf.mxu0 }
 0x126   :  { %v725_v61 = vadd.f32 %v724_v59, %v705_v58 }
 0x128   :  { %v744_v62 = vpop.f32.mrf.mxu1 }
 0x129   :  { %v745_v0 = vadd.f32 %v744_v62, %v725_v61 }
 0x12b   :  { %v765_v1 = vadd.f32 %v764_v63, %v745_v0 }
 0x12d   :  { %v767_v2 = vmax.f32 %v765_v1, 0.0 }
 0x12f   :  { %804 = vmatmul.f32.vlgmr.msra.gmra.mxu3 %v767_v2 }
 0x1b2   :  { %v805_v20 = vpop.f32.mrf.mxu3 }
 0x1b3   :  { %v806_v21 = vadd.f32 %v910_v19, %v805_v20 }
 0x1b5   :  { %v808_v22 = vmax.f32 %v806_v21, 0.0 }
 0x1b7   :  { %845 = vmatmul.f32.vlgmr.msrb.gmra.mxu2 %v808_v22 }
 0x23a   :  { %v846_v27 = vpop.f32.mrf.mxu2 }
 0x23b   :  { %v847_v28 = vadd.f32 %v911_v26, %v846_v27 }
 0x23d   :  { %v849_v29 = vmax.f32 %v847_v28, 0.0 }
 0x23f   :  { %886 = vmatmul.f32.vlgmr.msrb.gmra.mxu0 %v849_v29 }
 0x2bc   :  { %v887_v31 = vpop.f32.mrf.mxu0 }
 0x2bd   :  { %v888_v32 = vadd.f32 %v912_v30, %v887_v31 }
 0x2bf   :  { %890 = vst [vmem:[#allocation2] sm:$0x3] %v888_v32 }
 0x2c0   :  { %901 = dma.vmem_to_hbm [thread:$0]  %s897_s29, 32, %s899_s1, [#allocation3]  }
 0x2c1   :  { %937 = dma.done.wait [#allocation3], 32  }
 0x2c2   :  { %938 = vsyncadd [#allocation3], 4294967264 }
 0x2c3   :  { %906 = vsyncpa [#allocation3], 1 }

</bundles_post_ra>
